<compile_context>
chip_gen: v5e
topology: v5e:2x2
jax: 0.10.0
libtpu: 0.0.40
codegen_flags: <defaults>
</compile_context>

<pallas_src>
import jax
import jax.numpy as jnp
from jax.experimental import pallas as pl
from jax.experimental.pallas import tpu as pltpu


def _round_up(n, m):
    return (n + m - 1) // m * m


def film_block_kernel(xc_ref, w1_ref, b1_ref, w2_ref, wcx_ref, bf_ref, o_ref):
    """One batch tile of the FiLM block.

    xc_ref  : (tB, P_io)   packed [x | condition | 0]      (compute dtype)
    w1_ref  : (P_io, P_h)  layer1 weight (condition rows zeroed)
    b1_ref  : (1, P_h)     layer1 bias (f32)
    w2_ref  : (P_h, P_io)  layer2 weight
    wcx_ref : (P_io, P_io) [I ; Wc ; 0]  (identity residual + FiLM weight)
    bf_ref  : (1, P_io)    fused bias b2 + bc (f32)
    o_ref   : (tB, P_io)
    """
    xc = xc_ref[...]                                    # native compute dtype -> MXU

    # StoResBlock.layer1: Linear + ReLU (f32 accumulate, back to compute dtype)
    h = jnp.dot(xc, w1_ref[...], preferred_element_type=jnp.float32) + b1_ref[...]
    h = jnp.maximum(h, 0.0).astype(xc.dtype)

    # layer2 + identity residual + FiLM condition_layer as two MXU dots
    # (the residual "+ x" lives in the identity block of wcx).
    o = jnp.dot(h, w2_ref[...], preferred_element_type=jnp.float32)
    o = o + jnp.dot(xc, wcx_ref[...], preferred_element_type=jnp.float32)

    # f32 epilogue: fused bias (b2 + bc); cast only at the store.
    o_ref[...] = (o + bf_ref[...]).astype(o_ref.dtype)


def film_block_forward(x, condition, params, *, tile_b=512,
                       compute_dtype=jnp.bfloat16):
    """x: (B, in_dim), condition: (B, condition_dim) -> (B, out_dim)."""
    w1t, b1, w2t, b2, wct, bc = params
    B, in_dim = x.shape
    cond_dim = condition.shape[1]
    hidden_dim = w1t.shape[1]
    out_dim = w2t.shape[1]
    assert out_dim == in_dim, "identity-residual config requires out_dim == in_dim"

    out_dtype = x.dtype
    cdt = jnp.dtype(compute_dtype)
    itemsize = cdt.itemsize
    row_mult = max(8, 32 // itemsize)          # f32 -> 8 sublanes, bf16 -> 16

    # MXU-friendly padded widths: 256 alignment for wide dims (v6e/v7x 2x256x256
    # arrays), 128 otherwise (v5e 4x128x128; don't over-pad small dims).
    io_req = max(in_dim + cond_dim, out_dim)
    p_io = _round_up(io_req, 256 if io_req >= 256 else 128)
    p_h = _round_up(hidden_dim, 256 if hidden_dim >= 256 else 128)

    # ---- batch tile: large by default, >=2 grid steps for megacore, VMEM-capped
    t_b = _round_up(min(tile_b, B), row_mult)
    if _round_up(B, t_b) // t_b < 2 and B > row_mult:
        t_b = _round_up((B + 1) // 2, row_mult)     # split so both TCs get work

    def vmem_estimate(tb):
        weights = (p_io * p_h + p_h * p_io + p_io * p_io) * itemsize \
                  + (p_h + p_io) * 4
        streamed = 2 * 2 * tb * p_io * max(itemsize, jnp.dtype(out_dtype).itemsize)
        interm = tb * (p_h + p_io) * 4 + tb * p_h * itemsize
        return weights + streamed + interm

    while t_b > row_mult and vmem_estimate(t_b) > (40 << 20):
        t_b = _round_up(t_b // 2, row_mult)
    b_pad = _round_up(B, t_b)

    # Raise v5e's 16 MiB default scoped VMEM when needed; stay under v7x's
    # 64 MiB physical per TensorCore.
    vmem_limit = int(min(64 << 20, max(32 << 20, 2 * vmem_estimate(t_b))))

    # ---- pack inputs: xc = [x | condition | 0] in one concat+pad fusion ----
    xc = jnp.concatenate([x.astype(cdt), condition.astype(cdt)], axis=1)
    xc = jnp.pad(xc, ((0, b_pad - B), (0, p_io - in_dim - cond_dim)))

    # ---- layer1 weight: only x-rows active (condition / pad rows zero) ----
    w1_p = jnp.pad(w1t.astype(cdt), ((0, p_io - in_dim), (0, p_h - hidden_dim)))
    b1_p = jnp.pad(b1.astype(jnp.float32), (0, p_h - hidden_dim)).reshape(1, p_h)

    # ---- layer2 weight ----
    w2_p = jnp.pad(w2t.astype(cdt), ((0, p_h - hidden_dim), (0, p_io - out_dim)))

    # ---- residual + FiLM weight for xc: rows = [I_x ; Wc ; 0] ----
    top = jnp.concatenate(
        [jnp.eye(in_dim, out_dim, dtype=cdt), wct.astype(cdt)], axis=0)
    wcx_p = jnp.pad(top, ((0, p_io - in_dim - cond_dim), (0, p_io - out_dim)))

    # ---- fused bias b2 + bc (f32) ----
    bf_p = jnp.pad((b2 + bc).astype(jnp.float32),
                   (0, p_io - out_dim)).reshape(1, p_io)

    grid = (b_pad // t_b,)
    out = pl.pallas_call(
        film_block_kernel,
        out_shape=jax.ShapeDtypeStruct((b_pad, p_io), out_dtype),
        grid=grid,
        in_specs=[
            pl.BlockSpec((t_b, p_io), lambda i: (i, 0)),     # xc (streamed)
            pl.BlockSpec((p_io, p_h), lambda i: (0, 0)),     # W1 (resident)
            pl.BlockSpec((1, p_h), lambda i: (0, 0)),        # b1 (resident)
            pl.BlockSpec((p_h, p_io), lambda i: (0, 0)),     # W2 (resident)
            pl.BlockSpec((p_io, p_io), lambda i: (0, 0)),    # [I ; Wc ; 0]
            pl.BlockSpec((1, p_io), lambda i: (0, 0)),       # b2 + bc
        ],
        out_specs=pl.BlockSpec((t_b, p_io), lambda i: (i, 0)),
        compiler_params=pltpu.CompilerParams(
            dimension_semantics=("parallel",),
            vmem_limit_bytes=vmem_limit),
    )(xc, w1_p, b1_p, w2_p, wcx_p, bf_p)

    # Strip batch / lane padding (padded output columns hold discarded garbage).
    return out[:B, :out_dim]


def init_params(key, in_dim, hidden_dim, out_dim, cond_dim):
    """Deterministic PyTorch-Linear-style init (uniform +-1/sqrt(fan_in))."""
    def linear(k, fan_in, fan_out):
        kw, kb = jax.random.split(k)
        bound = 1.0 / jnp.sqrt(fan_in)
        # stored transposed: (fan_in, fan_out)
        w_t = jax.random.uniform(kw, (fan_in, fan_out), jnp.float32, -bound, bound)
        b = jax.random.uniform(kb, (fan_out,), jnp.float32, -bound, bound)
        return w_t, b

    k1, k2, k3 = jax.random.split(key, 3)
    w1t, b1 = linear(k1, in_dim, hidden_dim)       # StoResBlock.layer1 Linear
    w2t, b2 = linear(k2, hidden_dim, out_dim)      # StoResBlock.layer2 Linear
    wct, bc = linear(k3, cond_dim, out_dim)        # FiLM condition_layer
    return (w1t, b1, w2t, b2, wct, bc)


def reference_forward(x, condition, params):
    w1t, b1, w2t, b2, wct, bc = params
    h = jnp.maximum(x @ w1t + b1, 0.0)
    o = h @ w2t + b2 + x
    beta = condition @ wct + bc
    return o + beta


if __name__ == "__main__":
    B, in_dim, out_dim, hidden_dim, cond_dim = 32, 32, 32, 64, 16

    key = jax.random.PRNGKey(0)
    kx, kc, kp = jax.random.split(key, 3)
    x = jax.random.normal(kx, (B, in_dim), jnp.float32)
    condition = jax.random.normal(kc, (B, cond_dim), jnp.float32)
    params = init_params(kp, in_dim, hidden_dim, out_dim, cond_dim)

    ref = reference_forward(x, condition, params)

    # f32 compute path: bit-for-bit-ish against the reference (tight tolerance).
    out_f32 = film_block_forward(x, condition, params, tile_b=16,
                                 compute_dtype=jnp.float32)
    out_f32 = jax.block_until_ready(out_f32)
    assert out_f32.shape == (B, out_dim)
    assert jnp.allclose(out_f32, ref, atol=1e-4, rtol=1e-4), "f32 path mismatch"

    # bf16 MXU path (default): operands bf16, f32 accumulation, f32 store;
    # tolerance relaxed to bf16 operand precision.
    out_bf16 = film_block_forward(x, condition, params, tile_b=16,
                                  compute_dtype=jnp.bfloat16)
    out_bf16 = jax.block_until_ready(out_bf16)
    assert out_bf16.shape == (B, out_dim)
    assert jnp.allclose(out_bf16, ref, atol=1e-1, rtol=5e-2), "bf16 path mismatch"

    print("KERNEL_OK")
</pallas_src>

<mosaic_0001>
module attributes {stable_mosaic.version = 11 : i64} {
  func.func @film_block_kernel(%arg0: i32, %arg1: memref<16x128xf32, #tpu.memory_space<vmem>>, %arg2: memref<128x128xf32, #tpu.memory_space<vmem>>, %arg3: memref<1x128xf32, #tpu.memory_space<vmem>>, %arg4: memref<128x128xf32, #tpu.memory_space<vmem>>, %arg5: memref<128x128xf32, #tpu.memory_space<vmem>>, %arg6: memref<1x128xf32, #tpu.memory_space<vmem>>, %arg7: memref<16x128xf32, #tpu.memory_space<vmem>>) attributes {dimension_semantics = [#tpu.dimension_semantics<parallel>], iteration_bounds = array<i64: 2>, scalar_prefetch = 0 : i64, scratch_operands = 0 : i64, tpu.core_type = #tpu.core_type<tc>, window_params = [{transform_indices = @transform_0, window_bounds = array<i64: 16, 128>}, {pipeline_mode = #tpu.pipeline_mode<synchronous>, transform_indices = @transform_1, window_bounds = array<i64: 128, 128>}, {pipeline_mode = #tpu.pipeline_mode<synchronous>, transform_indices = @transform_2, window_bounds = array<i64: 1, 128>}, {pipeline_mode = #tpu.pipeline_mode<synchronous>, transform_indices = @transform_3, window_bounds = array<i64: 128, 128>}, {pipeline_mode = #tpu.pipeline_mode<synchronous>, transform_indices = @transform_4, window_bounds = array<i64: 128, 128>}, {pipeline_mode = #tpu.pipeline_mode<synchronous>, transform_indices = @transform_5, window_bounds = array<i64: 1, 128>}, {transform_indices = @transform_6, window_bounds = array<i64: 16, 128>}]} {
    %c0 = arith.constant 0 : index
    %c0_0 = arith.constant 0 : index
    %0 = vector.load %arg1[%c0, %c0_0] : memref<16x128xf32, #tpu.memory_space<vmem>>, vector<16x128xf32>
    %c0_1 = arith.constant 0 : index
    %c0_2 = arith.constant 0 : index
    %1 = vector.load %arg2[%c0_1, %c0_2] : memref<128x128xf32, #tpu.memory_space<vmem>>, vector<128x128xf32>
    %cst = arith.constant dense<0.000000e+00> : vector<16x128xf32>
    %2 = tpu.matmul %0, %1, %cst {dimension_numbers = #tpu.dot_dimension_numbers<[1], [0], [0], [1], [0, 0, 1, 1], [], []>} : vector<16x128xf32>, vector<128x128xf32>, vector<16x128xf32> -> vector<16x128xf32>
    %c0_3 = arith.constant 0 : index
    %c0_4 = arith.constant 0 : index
    %3 = vector.load %arg3[%c0_3, %c0_4] : memref<1x128xf32, #tpu.memory_space<vmem>>, vector<1x128xf32>
    %4 = vector.broadcast %3 : vector<1x128xf32> to vector<16x128xf32>
    %5 = arith.addf %2, %4 : vector<16x128xf32>
    %cst_5 = arith.constant 0.000000e+00 : f32
    %6 = vector.broadcast %cst_5 : f32 to vector<16x128xf32>
    %7 = arith.maximumf %5, %6 : vector<16x128xf32>
    %c0_6 = arith.constant 0 : index
    %c0_7 = arith.constant 0 : index
    %8 = vector.load %arg4[%c0_6, %c0_7] : memref<128x128xf32, #tpu.memory_space<vmem>>, vector<128x128xf32>
    %cst_8 = arith.constant dense<0.000000e+00> : vector<16x128xf32>
    %9 = tpu.matmul %7, %8, %cst_8 {dimension_numbers = #tpu.dot_dimension_numbers<[1], [0], [0], [1], [0, 0, 1, 1], [], []>} : vector<16x128xf32>, vector<128x128xf32>, vector<16x128xf32> -> vector<16x128xf32>
    %c0_9 = arith.constant 0 : index
    %c0_10 = arith.constant 0 : index
    %10 = vector.load %arg5[%c0_9, %c0_10] : memref<128x128xf32, #tpu.memory_space<vmem>>, vector<128x128xf32>
    %cst_11 = arith.constant dense<0.000000e+00> : vector<16x128xf32>
    %11 = tpu.matmul %0, %10, %cst_11 {dimension_numbers = #tpu.dot_dimension_numbers<[1], [0], [0], [1], [0, 0, 1, 1], [], []>} : vector<16x128xf32>, vector<128x128xf32>, vector<16x128xf32> -> vector<16x128xf32>
    %12 = arith.addf %9, %11 : vector<16x128xf32>
    %c0_12 = arith.constant 0 : index
    %c0_13 = arith.constant 0 : index
    %13 = vector.load %arg6[%c0_12, %c0_13] : memref<1x128xf32, #tpu.memory_space<vmem>>, vector<1x128xf32>
    %14 = vector.broadcast %13 : vector<1x128xf32> to vector<16x128xf32>
    %15 = arith.addf %12, %14 : vector<16x128xf32>
    %c0_14 = arith.constant 0 : index
    %c0_15 = arith.constant 0 : index
    %16 = vector.load %arg7[%c0_14, %c0_15] : memref<16x128xf32, #tpu.memory_space<vmem>>, vector<16x128xf32>
    tpu.vector_store %arg7[%c0_14, %c0_15], %15 {strides = array<i32>} : memref<16x128xf32, #tpu.memory_space<vmem>>, vector<16x128xf32>,
    return
  }
  func.func @transform_0(%arg0: i32) -> (i32, i32) {
    %c0_i32 = arith.constant 0 : i32
    %c0_i32_0 = arith.constant 0 : i32
    return %arg0, %c0_i32 : i32, i32
  }
  func.func @transform_1(%arg0: i32) -> (i32, i32) {
    %c0_i32 = arith.constant 0 : i32
    %c0_i32_0 = arith.constant 0 : i32
    %c0_i32_1 = arith.constant 0 : i32
    return %c0_i32, %c0_i32_0 : i32, i32
  }
  func.func @transform_2(%arg0: i32) -> (i32, i32) {
    %c0_i32 = arith.constant 0 : i32
    %c0_i32_0 = arith.constant 0 : i32
    %c0_i32_1 = arith.constant 0 : i32
    return %c0_i32, %c0_i32_0 : i32, i32
  }
  func.func @transform_3(%arg0: i32) -> (i32, i32) {
    %c0_i32 = arith.constant 0 : i32
    %c0_i32_0 = arith.constant 0 : i32
    %c0_i32_1 = arith.constant 0 : i32
    return %c0_i32, %c0_i32_0 : i32, i32
  }
  func.func @transform_4(%arg0: i32) -> (i32, i32) {
    %c0_i32 = arith.constant 0 : i32
    %c0_i32_0 = arith.constant 0 : i32
    %c0_i32_1 = arith.constant 0 : i32
    return %c0_i32, %c0_i32_0 : i32, i32
  }
  func.func @transform_5(%arg0: i32) -> (i32, i32) {
    %c0_i32 = arith.constant 0 : i32
    %c0_i32_0 = arith.constant 0 : i32
    %c0_i32_1 = arith.constant 0 : i32
    return %c0_i32, %c0_i32_0 : i32, i32
  }
  func.func @transform_6(%arg0: i32) -> (i32, i32) {
    %c0_i32 = arith.constant 0 : i32
    %c0_i32_0 = arith.constant 0 : i32
    return %arg0, %c0_i32 : i32, i32
  }
}

</mosaic_0001>

<bundles_post_ra>
// kernel: tpu_custom_call.1
= control target key start
LH: loop header
LB: loop body
LE: loop exit
PB: predicated region body
PF: predicated region fallthrough
CT: control target
= control target key end

     0   :  { %11 = vsyncpa [#allocation3], 0  ;;  %s1118_s0 = inlined_call_operand.hbm [shape: f32[32,128], index: 0, kind: input, shape index: {}]   ;;  %s1119_s1 = inlined_call_operand.hbm [shape: f32[128,128], index: 1, kind: input, shape index: {}]   ;;  %s1120_s2 = inlined_call_operand.vmem [shape: f32[1,128], index: 2, kind: input, shape index: {}]   ;;  %s1121_s3 = inlined_call_operand.hbm [shape: f32[128,128], index: 3, kind: input, shape index: {}]   ;;  %s1122_s4 = inlined_call_operand.hbm [shape: f32[128,128], index: 4, kind: input, shape index: {}]   ;;  %s1123_s5 = inlined_call_operand.vmem [shape: f32[1,128], index: 5, kind: input, shape index: {}]   ;;  %s1124_s6 = inlined_call_operand.hbm [shape: f32[32,128], index: 6, kind: output, shape index: {}]  }
   0x1   :  { %13 = vsyncpa [#allocation3 + $0x1], 0 }
   0x2   :  { %14 = vsyncpa [#allocation6], 0 }
   0x3   :  { %15 = vsyncpa [#allocation9], 0 }
   0x4   :  { %16 = vsyncpa [#allocation4], 0 }
   0x5   :  { %18 = vsyncpa [#allocation4 + $0x1], 0  ;;  %s934_s21 = smov 0   ;;  %s936_s22 = smov 0  }
   0x6   :  { %s938_s23 = smov 0   ;;  %s940_s24 = smov 0  }
   0x7 LB: > { %s955_s25 = sadd.s32 4294967295, %s890_s24   ;;  %s575_s26 = sadd.s32 4294967294, %s890_s24   ;;  %s890_s24 = sphi %s940_s24, %s1139_s24   ;;  %s886_s23 = sphi %s938_s23, %s1138_s23   ;;  %s882_s22 = sphi %s936_s22, %s1137_s22   ;;  %s878_s21 = sphi %s934_s21, %s1136_s21  }
   0x8   : > { %p44_p0 = scmp.ne.s32.totalorder %s882_s22, %s878_s21  ;;  %p45_p1 = scmp.eq.s32.totalorder %s955_s25, 0 }
   0x9   : > { %p173_p2 = scmp.eq.s32.totalorder %s955_s25, 1  ;;  %p179_p3 = scmp.eq.s32.totalorder %s575_s26, 1 }
   0xa   : > { %p964_p4 = por %p45_p1, %p44_p0  ;;  %p576_p5 = scmp.ge.s32.totalorder %s890_s24, 1 }
   0xb   : > { %p969_p6 = por %p179_p3, %p44_p0  ;;  %p186_p7 = scmp.lt.s32.totalorder %s890_s24, 3 }
   0xc   : > { %s197_s7 = sshll.u32 %s1119_s1, 4  ;;  %s892_s9 = smov [#allocation5]   ;;  %s198_s7 = int_to_ptr.hbm [resolvable:$true] %s197_s7 }
   0xd   : > { %p977_p8 = pnand %p576_p5, %p186_p7  ;;  %s199_s10 = sshll.u32 %s892_s9, 4  ;;  %s200_s10 = int_to_ptr.vmem [resolvable:$true] %s199_s10 }
   0xe   : > { %s214_s14 = sshll.u32 %s1121_s3, 4  ;;  %s1125_s15 = smov 128   ;;  %s215_s14 = int_to_ptr.hbm [resolvable:$true] %s214_s14 }
   0xf   : > { %p629_p9 = pneg %p977_p8  ;;  %s1126_s16 = smov 8  }
  0x10   : > { %s895_s17 = smov [#allocation7]   ;;  %s228_s26 = sshll.u32 %s1122_s4, 4  ;;  %s229_s26 = int_to_ptr.hbm [resolvable:$true] %s228_s26 }
  0x11   : > { %p985_p10 = pnand %p629_p9, %p45_p1  ;;  %s216_s18 = sshll.u32 %s895_s17, 4  ;;  %s217_s18 = int_to_ptr.vmem [resolvable:$true] %s216_s18 }
  0x12   : > { %s896_s29 = smov [#allocation8]   ;;  %p38_p13 = scmp.ne.s32.totalorder %s886_s23, %s882_s22 }
  0x13   : > { %632 = dma.hbm_to_vmem [thread:$0]  (!%p985_p10), %s198_s7, 2048, %s200_s10, [#allocation6], %s1125_s15, %s1125_s15, %s1126_s16  }
  0x14   : > { %635 = dma.hbm_to_vmem [thread:$0]  (!%p985_p10), %s215_s14, 2048, %s217_s18, [#allocation6], %s1125_s15, %s1125_s15, %s1126_s16  }
  0x15   : > { %s230_s30 = sshll.u32 %s896_s29, 4  ;;  %s1007_s7 = sadd.s32 1, %s890_s24   ;;  %s231_s30 = int_to_ptr.vmem [resolvable:$true] %s230_s30 }
  0x16   : > { %638 = dma.hbm_to_vmem [thread:$0]  (!%p985_p10), %s229_s26, 2048, %s231_s30, [#allocation9], %s1125_s15, %s1125_s15, %s1126_s16  }
  0x17   : > { %s28_s9 = ssub.s32 %s890_s24, %s1007_s7  ;;  %s31_s10 = sadd.s32 1, %s886_s23 }
  0x18   : > { %p29_p12 = scmp.eq.s32.totalorder %s28_s9, 0  ;;  %p39_p0 = scmp.eq.s32.totalorder %s890_s24, 0 }
  0x19   : > { %p1025_p3 = por %p173_p2, %p38_p13  ;;  %p650_p5 = scmp.lt.s32.totalorder %s890_s24, 2 }
  0x1a   : > { %s1021_s12 = scalar_select %p29_p12, %s886_s23, %s31_s10  }
  0x1b   : > { %s247_s14 = sand.u32 1, %s886_s23   ;;  %s595_s11 = sshll.u32 %s890_s24, 4 }
  0x1c   : > { %p40_p7 = por %p39_p0, %p38_p13  ;;  %s581_s17 = sshll.u32 %s247_s14, 4 }
  0x1d   : > { %s256_s20 = scalar_lea.hbm %s1118_s0, %s595_s11  ;;  %s251_s29 = scalar_lea.vmem [#allocation2], %s581_s17 }
  0x1e   : > { %s257_s26 = sshll.u32 %s256_s20, 4  ;;  %s259_s30 = sshll.u32 %s251_s29, 4  ;;  %s258_s26 = int_to_ptr.hbm [resolvable:$true] %s257_s26  ;;  %s260_s30 = int_to_ptr.vmem [resolvable:$true] %s259_s30 }
  0x1f   : > { %p1035_p9 = pnand %p650_p5, %p40_p7  ;;  %s248_s10 = scalar_lea.sflag [#allocation3], %s247_s14 }
  0x20   : > { %s786_s15 = sshra.s32 %s258_s26, 4  ;;  %s793_s17 = scalar_lea.hbm %s1118_s0, 32  ;;  %s787_s15 = int_to_ptr.hbm [resolvable:$true] %s786_s15 }
  0x21   : > { %s788_s16 = scalar_lea.hbm %s787_s15, 16  ;;  %p790_p10 = pneg %p1035_p9 }
  0x22   : > { %p789_p2 = scmp.ne.s32.totalorder %s787_s15, %s788_s16  ;;  %p794_p0 = scmp.lt.s32.totalorder %s787_s15, %s1118_s0 }
  0x23   : > { %p795_p5 = scmp.lt.s32.totalorder %s793_s17, %s788_s16 }
  0x24   : > { %p791_p12 = pnand %p790_p10, %p789_p2 }
  0x25   : > { %p796_p7 = por %p795_p5, %p794_p0 }
  0x26   : > { %p792_p13 = pneg %p791_p12 }
  0x28   : > { %p797_p11 = pnand %p796_p7, %p792_p13 }
  0x2a   : > { %800 = shalt.err (!%p797_p11)
}
  0x2b   : > { %s1133_s14 = smov 8   ;;  %s1134_s29 = smov 128  }
  0x2c   : > { %642 = dma.hbm_to_vmem [thread:$0]  (!%p1035_p9), %s258_s26, 256, %s260_s30, %s248_s10, %s1134_s29, %s1134_s29, %s1133_s14  }
  0x2d   : > { %271 = sbr.rel (%p977_p8) target bundleno = 365 (0x16d), region = 44  ;;  %s1055_s11 = sand.u32 (!%p977_p8), 1, %s882_s22  }
  0x2e   : > { %s585_s15 = sshll.u32 (!%p977_p8), %s1055_s11, 4  ;;  %s274_s16 = scalar_lea.sflag (!%p977_p8), [#allocation3], %s1055_s11 }
  0x2f   : > { %s1061_s18 = scalar_lea.vmem (!%p977_p8), [#allocation2], %s585_s15 }
  0x32   : > { %861 = dma.done.wait (%p964_p4), %s274_s16, 256  }
  0x33   : > { %863 = vsyncadd (%p964_p4), %s274_s16, 4294967040 }
  0x34   : > { %865 = dma.done.wait (%p45_p1), [#allocation6], 4096  }
  0x35   : > { %867 = vsyncadd (%p45_p1), [#allocation6], 4294963200 }
  0x36   : > { %869 = dma.done.wait (%p45_p1), [#allocation9], 2048  }
  0x37   : > { %871 = vsyncadd (%p45_p1), [#allocation9], 4294965248  ;;  %v341_v0 = vld [vmem:[#allocation5 + $0x78] sm:$0xff]  ;;  %v340_v1 = vld [vmem:[#allocation5 + $0x70] sm:$0xff]  ;;  %s596_s9 = sshll.u32 %s955_s25, 4  ;;  %s321_s20 = scalar_lea.vmem [#allocation10], %s585_s15 }
  0x38   : > { %346 = vmatpush.msra.mxu0 %v341_v0  ;;  %597 = vmatpush.msra.mxu3 %v341_v0  ;;  %v339_v2 = vld [vmem:[#allocation5 + $0x68] sm:$0xff]  ;;  %v338_v3 = vld [vmem:[#allocation5 + $0x60] sm:$0xff]  ;;  %v337_v4 = vld [vmem:[#allocation5 + $0x58] sm:$0xff]  ;;  %s469_s19 = scalar_lea.hbm %s1124_s6, %s596_s9  ;;  %s470_s14 = sshll.u32 %s321_s20, 4  ;;  %s471_s14 = int_to_ptr.vmem [resolvable:$true] %s470_s14 }
  0x39   : > { %v386_v5 = vld [vmem:[#allocation7 + $0x78] sm:$0xff]  ;;  %v385_v6 = vld [vmem:[#allocation7 + $0x70] sm:$0xff]  ;;  %v384_v10 = vld [vmem:[#allocation7 + $0x68] sm:$0xff]  ;;  %s472_s29 = sshll.u32 %s469_s19, 4  ;;  %s458_s16 = scalar_lea.sflag [#allocation4], %s1055_s11  ;;  %s473_s29 = int_to_ptr.hbm [resolvable:$true] %s472_s29 }
  0x3a   : > { %347 = vmatpush.msra.mxu0 %v340_v1  ;;  %598 = vmatpush.msra.mxu3 %v340_v1  ;;  %v402_v7 = vld [vmem:[#allocation8 + $0x78] sm:$0xff]  ;;  %v401_v8 = vld [vmem:[#allocation8 + $0x70] sm:$0xff]  ;;  %v400_v11 = vld [vmem:[#allocation8 + $0x68] sm:$0xff]  ;;  %s830_s25 = sshra.s32 %s473_s29, 4  ;;  %s836_s8 = scalar_lea.hbm %s1124_s6, 32  ;;  %s831_s25 = int_to_ptr.hbm [resolvable:$true] %s830_s25 }
  0x3b   : > { %v336_v9 = vld [vmem:[#allocation5 + $0x50] sm:$0xff]  ;;  %426 = vmatpush.msra.mxu2 %v386_v5  ;;  %403 = vmatpush.msra.mxu1 %v402_v7  ;;  %v335_v12 = vld [vmem:[#allocation5 + $0x48] sm:$0xff]  ;;  %v383_v13 = vld [vmem:[#allocation7 + $0x60] sm:$0xff]  ;;  %p837_p11 = scmp.lt.s32.totalorder %s831_s25, %s1124_s6 }
  0x3c   : > { %348 = vmatpush.msra.mxu0 %v339_v2  ;;  %599 = vmatpush.msra.mxu3 %v339_v2  ;;  %v399_v14 = vld [vmem:[#allocation8 + $0x60] sm:$0xff]  ;;  %v382_v16 = vld [vmem:[#allocation7 + $0x58] sm:$0xff]  ;;  %v381_v19 = vld [vmem:[#allocation7 + $0x50] sm:$0xff] }
  0x3d   : > { %427 = vmatpush.msra.mxu2 %v385_v6  ;;  %404 = vmatpush.msra.mxu1 %v401_v8  ;;  %v334_v15 = vld [vmem:[#allocation5 + $0x40] sm:$0xff]  ;;  %v398_v17 = vld [vmem:[#allocation8 + $0x58] sm:$0xff]  ;;  %v397_v20 = vld [vmem:[#allocation8 + $0x50] sm:$0xff] }
  0x3e   : > { %349 = vmatpush.msra.mxu0 %v338_v3  ;;  %600 = vmatpush.msra.mxu3 %v338_v3  ;;  %v333_v18 = vld [vmem:[#allocation5 + $0x38] sm:$0xff]  ;;  %v332_v21 = vld [vmem:[#allocation5 + $0x30] sm:$0xff]  ;;  %v380_v22 = vld [vmem:[#allocation7 + $0x48] sm:$0xff] }
  0x3f   : > { %428 = vmatpush.msra.mxu2 %v384_v10  ;;  %405 = vmatpush.msra.mxu1 %v400_v11  ;;  %v396_v23 = vld [vmem:[#allocation8 + $0x48] sm:$0xff]  ;;  %v379_v25 = vld [vmem:[#allocation7 + $0x40] sm:$0xff]  ;;  %v378_v28 = vld [vmem:[#allocation7 + $0x38] sm:$0xff] }
  0x40   : > { %350 = vmatpush.msra.mxu0 %v337_v4  ;;  %601 = vmatpush.msra.mxu3 %v337_v4  ;;  %v331_v24 = vld [vmem:[#allocation5 + $0x28] sm:$0xff]  ;;  %v395_v26 = vld [vmem:[#allocation8 + $0x40] sm:$0xff]  ;;  %v394_v29 = vld [vmem:[#allocation8 + $0x38] sm:$0xff] }
  0x41   : > { %429 = vmatpush.msra.mxu2 %v383_v13  ;;  %406 = vmatpush.msra.mxu1 %v399_v14  ;;  %v330_v27 = vld [vmem:[#allocation5 + $0x20] sm:$0xff]  ;;  %v329_v30 = vld [vmem:[#allocation5 + $0x18] sm:$0xff]  ;;  %v377_v31 = vld [vmem:[#allocation7 + $0x30] sm:$0xff] }
  0x42   : > { %351 = vmatpush.msra.mxu0 %v336_v9  ;;  %602 = vmatpush.msra.mxu3 %v336_v9  ;;  %v393_v32 = vld [vmem:[#allocation8 + $0x30] sm:$0xff]  ;;  %v376_v34 = vld [vmem:[#allocation7 + $0x28] sm:$0xff]  ;;  %v375_v36 = vld [vmem:[#allocation7 + $0x20] sm:$0xff] }
  0x43   : > { %430 = vmatpush.msra.mxu2 %v382_v16  ;;  %407 = vmatpush.msra.mxu1 %v398_v17  ;;  %v328_v33 = vld [vmem:[#allocation5 + $0x10] sm:$0xff]  ;;  %v327_v35 = vld [vmem:[#allocation5 + $0x8] sm:$0xff]  ;;  %v326_v37 = vld [vmem:[#allocation5] sm:$0xff] }
  0x44   : > { %352 = vmatpush.msra.mxu0 %v335_v12  ;;  %603 = vmatpush.msra.mxu3 %v335_v12  ;;  %v324_v38 = vld [vmem:[%s1061_s18] sm:$0xff]  ;;  %v325_v39 = vld [vmem:[%s1061_s18 + $0x8] sm:$0xff]  ;;  %s832_s18 = scalar_lea.hbm %s831_s25, 16 }
  0x45   : > { %431 = vmatpush.msra.mxu2 %v381_v19  ;;  %408 = vmatpush.msra.mxu1 %v397_v20  ;;  %v374_v40 = vld [vmem:[#allocation7 + $0x18] sm:$0xff]  ;;  %v392_v41 = vld [vmem:[#allocation8 + $0x28] sm:$0xff]  ;;  %v373_v42 = vld [vmem:[#allocation7 + $0x10] sm:$0xff]  ;;  %p833_p1 = scmp.ne.s32.totalorder %s831_s25, %s832_s18  ;;  %p838_p9 = scmp.lt.s32.totalorder %s836_s8, %s832_s18 }
  0x46   : > { %353 = vmatpush.msra.mxu0 %v334_v15  ;;  %604 = vmatpush.msra.mxu3 %v334_v15  ;;  %v391_v43 = vld [vmem:[#allocation8 + $0x20] sm:$0xff]  ;;  %v372_v44 = vld [vmem:[#allocation7 + $0x8] sm:$0xff]  ;;  %v390_v45 = vld [vmem:[#allocation8 + $0x18] sm:$0xff] }
  0x47   : > { %432 = vmatpush.msra.mxu2 %v380_v22  ;;  %409 = vmatpush.msra.mxu1 %v396_v23  ;;  %v371_v46 = vld [vmem:[#allocation7] sm:$0xff]  ;;  %v389_v47 = vld [vmem:[#allocation8 + $0x10] sm:$0xff]  ;;  %v388_v48 = vld [vmem:[#allocation8 + $0x8] sm:$0xff]  ;;  %p834_p4 = pnand %p833_p1, %p1025_p3  ;;  %p839_p2 = por %p838_p9, %p837_p11 }
  0x48   : > { %354 = vmatpush.msra.mxu0 %v333_v18  ;;  %605 = vmatpush.msra.mxu3 %v333_v18  ;;  %v387_v49 = vld [vmem:[#allocation8] sm:$0xff] }
  0x49   : > { %433 = vmatpush.msra.mxu2 %v379_v25  ;;  %410 = vmatpush.msra.mxu1 %v395_v26  ;;  %v694_v50 = vld [vmem:[%s1120_s2] ss:$0 sm:$0xff]  ;;  %p835_p8 = pneg %p834_p4 }
  0x4a   : > { %355 = vmatpush.msra.mxu0 %v332_v21  ;;  %606 = vmatpush.msra.mxu3 %v332_v21  ;;  %v695_v58 = vld [vmem:[%s1123_s5] ss:$0 sm:$0xff] }
  0x4b   : > { %434 = vmatpush.msra.mxu2 %v378_v28  ;;  %411 = vmatpush.msra.mxu1 %v394_v29  ;;  %p840_p10 = pnand %p839_p2, %p835_p8 }
  0x4c   : > { %356 = vmatpush.msra.mxu0 %v331_v24  ;;  %607 = vmatpush.msra.mxu3 %v331_v24 }
  0x4d   : > { %435 = vmatpush.msra.mxu2 %v377_v31  ;;  %412 = vmatpush.msra.mxu1 %v393_v32 }
  0x4e   : > { %357 = vmatpush.msra.mxu0 %v330_v27  ;;  %608 = vmatpush.msra.mxu3 %v330_v27 }
  0x4f   : > { %436 = vmatpush.msra.mxu2 %v376_v34  ;;  %413 = vmatpush.msra.mxu1 %v392_v41 }
  0x50   : > { %358 = vmatpush.msra.mxu0 %v329_v30  ;;  %609 = vmatpush.msra.mxu3 %v329_v30 }
  0x51   : > { %437 = vmatpush.msra.mxu2 %v375_v36  ;;  %414 = vmatpush.msra.mxu1 %v391_v43 }
  0x52   : > { %359 = vmatpush.msra.mxu0 %v328_v33  ;;  %610 = vmatpush.msra.mxu3 %v328_v33 }
  0x53   : > { %438 = vmatpush.msra.mxu2 %v374_v40  ;;  %415 = vmatpush.msra.mxu1 %v390_v45 }
  0x54   : > { %360 = vmatpush.msra.mxu0 %v327_v35  ;;  %611 = vmatpush.msra.mxu3 %v327_v35 }
  0x55   : > { %439 = vmatpush.msra.mxu2 %v373_v42  ;;  %416 = vmatpush.msra.mxu1 %v389_v47 }
  0x56   : > { %361 = vmatpush.msra.mxu0 %v326_v37  ;;  %612 = vmatpush.msra.mxu3 %v326_v37 }
  0x57   : > { %362 = vmatmul.f32.vlgmr.msra.gmra.mxu0 %v324_v38  ;;  %365 = vmatmul.f32.vlgmr.msra.gmra.mxu3 %v325_v39 }
  0x58   : > { %440 = vmatpush.msra.mxu2 %v372_v44  ;;  %417 = vmatpush.msra.mxu1 %v388_v48 }
  0x5a   : > { %441 = vmatpush.msra.mxu2 %v371_v46  ;;  %418 = vmatpush.msra.mxu1 %v387_v49 }
  0x5b   : > { %419 = vmatmul.f32.vlgmr.msra.gmra.mxu1 %v324_v38 }
  0x63   : > { %422 = vmatmul.f32.gmra.mxu1 %v325_v39 }
  0xd4   : > { %v363_v51 = vpop.f32.mrf.mxu0 }
  0xd5   : > { %v364_v52 = vadd.f32 %v694_v50, %v363_v51 }
  0xd7   : > { %v369_v53 = vmax.f32 %v364_v52, 0.0 }
  0xd8   : > { %v420_v57 = vpop.f32.mrf.mxu1 }
  0xd9   : > { %442 = vmatmul.f32.vlgmr.msra.gmra.mxu2 %v369_v53 }
  0xda   : > { %v366_v54 = vpop.f32.mrf.mxu3 }
  0xdb   : > { %v367_v55 = vadd.f32 %v694_v50, %v366_v54 }
  0xdd   : > { %v370_v56 = vmax.f32 %v367_v55, 0.0 }
  0xe0   : > { %v423_v62 = vpop.f32.mrf.mxu1 }
  0xe1   : > { %445 = vmatmul.f32.gmra.mxu2 %v370_v56 }
 0x15c   : > { %v443_v59 = vpop.f32.mrf.mxu2 }
 0x15d   : > { %v444_v60 = vadd.f32 %v443_v59, %v420_v57 }
 0x15f   : > { %v453_v61 = vadd.f32 %v695_v58, %v444_v60 }
 0x161   : > { %455 = vst [vmem:[%s321_s20] sm:$0xff] %v453_v61 }
 0x164   : > { %v446_v63 = vpop.f32.mrf.mxu2 }
 0x165   : > { %v447_v0 = vadd.f32 %v446_v63, %v423_v62 }
 0x167   : > { %v454_v1 = vadd.f32 %v695_v58, %v447_v0 }
 0x169   : > { %456 = vst [vmem:[%s321_s20 + $0x8] sm:$0xff] %v454_v1 }
 0x16a   : > { %843 = shalt.err (!%p840_p10)
}
 0x16b   : > { %s897_s11 = smov 128   ;;  %s898_s9 = smov 8  }
 0x16c   : > { %627 = dma.vmem_to_hbm [thread:$0]  (%p1025_p3), %s471_s14, 256, %s473_s29, %s458_s16, %s897_s11, %s897_s11, %s898_s9  }
 0x16d PF: > { %s487_s10 = sand.u32 1, %s878_s21   ;;  %p1135_p12 = scmp.ge.s32.totalorder %s890_s24, 2 }
 0x16e   : > { %s488_s17 = scalar_lea.sflag [#allocation4], %s487_s10 }
 0x16f   : > { %p644_p13 = pnand %p1135_p12, %p969_p6 }
 0x171   : > { %p645_p0 = pneg %p644_p13 }
 0x173   : > { %873 = dma.done.wait (%p645_p0), %s488_s17, 256  }
 0x174   : > { %875 = vsyncadd (%p645_p0), %s488_s17, 4294967040  ;;  %p21_p5 = scmp.ge.s32.totalorder %s1007_s7, 4   ;;  %s1136_s21 = smov %s882_s22 }
 0x175   : > { %s1137_s22 = smov %s886_s23  ;;  %s1138_s23 = smov %s1021_s12 }
 0x176   : > { %s1139_s24 = smov %s1007_s7  ;;  %23 = sbr.rel (!%p21_p5) target bundleno = 7 (0x7), region = 101 }
 0x17b   :  { %494 = vsyncpa [#allocation3], 1 }
 0x17c   :  { %496 = vsyncpa [#allocation3 + $0x1], 1 }
 0x17d   :  { %497 = vsyncpa [#allocation6], 1 }
 0x17e   :  { %498 = vsyncpa [#allocation9], 1 }
 0x17f   :  { %499 = vsyncpa [#allocation4], 1 }
 0x180   :  { %501 = vsyncpa [#allocation4 + $0x1], 1 }

</bundles_post_ra>
